<compile_context>
chip_gen: v6e
topology: v6e:2x2x1
jax: 0.10.0
libtpu: 0.0.40
codegen_flags: <defaults>
</compile_context>

<pallas_src>
import jax
import jax.numpy as jnp
from jax.experimental import pallas as pl
from jax.experimental.pallas import tpu as pltpu

# Constants from the PyTorch module.
DIAGONAL_KERNELS_COUNT = 5 * 4
HORIZONTAL_KERNELS_COUNT = 5 * 2
INTERESTING_STATES_COUNT = 4
VERTICAL_KERNELS_COUNT = 5 * 2


def linear_value_input_size(field_h: int, field_w: int) -> int:
    plain = field_h * field_w * INTERESTING_STATES_COUNT
    return (plain
            + field_h * (field_w - 1) * HORIZONTAL_KERNELS_COUNT
            + (field_h - 1) * field_w * VERTICAL_KERNELS_COUNT
            + (field_h - 1) * (field_w - 1) * DIAGONAL_KERNELS_COUNT)


def _round_up(v: int, m: int) -> int:
    return ((v + m - 1) // m) * m


def _linear_value_kernel(x_ref, w_ref, b_ref, o_ref):
    # x_ref: (TILE_B, D) VMEM (streamed, native dtype); w_ref: (1, D) f32 VMEM
    # (resident across grid steps); b_ref: (1,) SMEM scalar; o_ref: (TILE_B, 1).
    x = x_ref[...].astype(jnp.float32)                 # no-op for f32 inputs
    # VPU multiply (broadcast (1,D) row over sublanes) + XLU lane-reduce.
    s = jnp.sum(x * w_ref[...], axis=-1, keepdims=True)   # (TILE_B, 1) f32
    o_ref[...] = (s + b_ref[0]).astype(o_ref.dtype)


# Double-buffer budget for (x tiles + lane-padded out tiles + weight row).
_BUF_BUDGET_BYTES = 40 * 1024 * 1024
_MAX_TILE_B = 8192           # ~5 us/step on v7x -> per-step overhead < 10%
_SPLIT_THRESHOLD_B = 512     # above this, force an even number (>=2) of grid steps


def _choose_tile(B: int, D: int, itemsize: int):
    row_align = {4: 8, 2: 16, 1: 32}.get(itemsize, 8)
    dp = _round_up(D, 128)                                   # lane padding in VMEM
    # Per-row VMEM cost: double-buffered x row + double-buffered lane-padded out row.
    per_row = 2 * dp * itemsize + 2 * 128 * 4
    max_rows = max(row_align, (_BUF_BUDGET_BYTES // per_row // row_align) * row_align)
    max_rows = min(max_rows, _MAX_TILE_B)

    n_steps = pl.cdiv(B, max_rows)
    if B > _SPLIT_THRESHOLD_B:
        # At least two (and an even number of) balanced steps so v7x's two
        # TensorCores split the batch and no tiny tail block is left over.
        n_steps = max(n_steps, 2)
        n_steps += n_steps % 2
    tile_b = min(B, _round_up(pl.cdiv(B, n_steps), row_align))
    return tile_b, dp


def linear_value_forward(x: jax.Array, weight: jax.Array, bias: jax.Array) -> jax.Array:
    """Pallas equivalent of LinearValue.forward.

    x:      (B, D) float32 or bfloat16 (read as-is; accumulated in f32)
    weight: (D,)   float32  (PyTorch stores (1, D); we use the flattened row)
    bias:   ()/(1,) float32
    returns (B, 1) float32
    """
    B, D = x.shape
    itemsize = jnp.dtype(x.dtype).itemsize
    w_row = jnp.reshape(weight.astype(jnp.float32), (1, D))   # tiny; VMEM-resident
    b_smem = jnp.reshape(bias.astype(jnp.float32), (1,))      # scalar -> SMEM

    tile_b, dp = _choose_tile(B, D, itemsize)
    grid = (pl.cdiv(B, tile_b),)

    # Actual double-buffered VMEM use (x tiles + lane-padded out tiles + weight).
    buf_bytes = (2 * tile_b * dp * itemsize
                 + 2 * tile_b * 128 * 4
                 + 2 * 8 * dp * 4)
    vmem_limit = max(32 * 1024 * 1024,
                     min(48 * 1024 * 1024, buf_bytes + 8 * 1024 * 1024))

    return pl.pallas_call(
        _linear_value_kernel,
        out_shape=jax.ShapeDtypeStruct((B, 1), jnp.float32),
        grid=grid,
        in_specs=[
            # x tiles streamed & double-buffered; last dim = full D (no host padding).
            pl.BlockSpec((tile_b, D), lambda i: (i, 0)),
            # weight row: same block every step -> no re-DMA, stays resident.
            pl.BlockSpec((1, D), lambda i: (0, 0)),
            # bias scalar in SMEM (keeps the vector-load slots for x).
            pl.BlockSpec(memory_space=pltpu.MemorySpace.SMEM),
        ],
        out_specs=pl.BlockSpec((tile_b, 1), lambda i: (i, 0)),
        compiler_params=pltpu.CompilerParams(
            # "parallel" lets the runtime shard the batch grid across v7x's 2 TCs
            # (no-op on v5e/v6e).  If a profile ever shows one core idle, switch
            # to pltpu.CORE_PARALLEL.
            dimension_semantics=("parallel",),
            vmem_limit_bytes=vmem_limit,
        ),
        cost_estimate=pl.CostEstimate(
            flops=2 * B * D,
            bytes_accessed=B * D * itemsize + D * 4 + B * 4,
            transcendentals=0,
        ),
    )(x, w_row, b_smem)


def init_linear_value_params(field_h: int, field_w: int, key: jax.Array):
    """Deterministic init mirroring init_weight_for_kernel_features()."""
    D = linear_value_input_size(field_h, field_w)
    plain = field_h * field_w * INTERESTING_STATES_COUNT
    k_blue, k_red, k_kern, k_bias = jax.random.split(key, 4)

    w_move = jnp.array([2.0], dtype=jnp.float32)
    w_blue = 1.0 + 0.1 * jax.random.normal(k_blue, (plain // 2,), dtype=jnp.float32)
    w_red = -1.0 + 0.1 * jax.random.normal(k_red, (plain // 2,), dtype=jnp.float32)
    w_kern = 0.2 * jax.random.normal(k_kern, (D - 1 - plain,), dtype=jnp.float32)
    weight = jnp.concatenate([w_move, w_blue, w_red, w_kern])  # (D,)

    # PyTorch Linear default bias init: U(-1/sqrt(D), 1/sqrt(D))
    bound = 1.0 / jnp.sqrt(jnp.float32(D))
    bias = jax.random.uniform(k_bias, (1,), jnp.float32, -bound, bound)
    return weight, bias


if __name__ == "__main__":
    field_h, field_w = 4, 4
    D = linear_value_input_size(field_h, field_w)  # 4*4*4 + 4*3*10 + 3*4*10 + 3*3*20 = 484

    key = jax.random.PRNGKey(0)
    k_params, k_x1, k_x2 = jax.random.split(key, 3)
    weight, bias = init_linear_value_params(field_h, field_w, k_params)

    # Small batch (single full-extent block path).
    batch = 2
    x_small = jax.random.normal(k_x1, (batch, D), dtype=jnp.float32)
    out_small = jax.block_until_ready(linear_value_forward(x_small, weight, bias))
    ref_small = x_small @ weight[:, None] + bias[0]
    assert out_small.shape == (batch, 1)
    assert jnp.allclose(out_small, ref_small, atol=1e-4, rtol=1e-4), (out_small, ref_small)

    # Larger odd batch (exercises the balanced, even-step grid + edge-block masking).
    big_batch = 1111
    x_big = jax.random.normal(k_x2, (big_batch, D), dtype=jnp.float32)
    out_big = jax.block_until_ready(linear_value_forward(x_big, weight, bias))
    ref_big = x_big @ weight[:, None] + bias[0]
    assert out_big.shape == (big_batch, 1)
    assert jnp.allclose(out_big, ref_big, atol=1e-4, rtol=1e-4)

    print("KERNEL_OK")
</pallas_src>

<mosaic_0001>
module attributes {stable_mosaic.version = 11 : i64} {
  func.func @_linear_value_kernel(%arg0: i32, %arg1: memref<2x484xf32, #tpu.memory_space<vmem>>, %arg2: memref<1x484xf32, #tpu.memory_space<vmem>>, %arg3: memref<1xf32, #tpu.memory_space<smem>>, %arg4: memref<2x1xf32, #tpu.memory_space<vmem>>) attributes {dimension_semantics = [#tpu.dimension_semantics<parallel>], iteration_bounds = array<i64: 1>, scalar_prefetch = 0 : i64, scratch_operands = 0 : i64, tpu.core_type = #tpu.core_type<tc>, window_params = [{transform_indices = @transform_0, window_bounds = array<i64: 2, 484>}, {pipeline_mode = #tpu.pipeline_mode<synchronous>, transform_indices = @transform_1, window_bounds = array<i64: 1, 484>}, {transform_indices = @transform_2, window_bounds = array<i64: 1>}, {transform_indices = @transform_3, window_bounds = array<i64: 2, 1>}]} {
    %c0 = arith.constant 0 : index
    %c0_0 = arith.constant 0 : index
    %0 = vector.load %arg1[%c0, %c0_0] : memref<2x484xf32, #tpu.memory_space<vmem>>, vector<2x484xf32>
    %c0_1 = arith.constant 0 : index
    %c0_2 = arith.constant 0 : index
    %1 = vector.load %arg2[%c0_1, %c0_2] : memref<1x484xf32, #tpu.memory_space<vmem>>, vector<1x484xf32>
    %2 = vector.broadcast %1 : vector<1x484xf32> to vector<2x484xf32>
    %3 = arith.mulf %0, %2 : vector<2x484xf32>
    %cst = arith.constant dense<0.000000e+00> : vector<2xf32>
    %4 = vector.multi_reduction <add>, %3, %cst [1] : vector<2x484xf32> to vector<2xf32>
    %5 = vector.shape_cast %4 : vector<2xf32> to vector<2x1xf32>
    %c0_3 = arith.constant 0 : index
    %6 = memref.load %arg3[%c0_3] : memref<1xf32, #tpu.memory_space<smem>>
    %7 = vector.broadcast %6 : f32 to vector<2x1xf32>
    %8 = arith.addf %5, %7 : vector<2x1xf32>
    %c0_4 = arith.constant 0 : index
    %c0_5 = arith.constant 0 : index
    %9 = vector.load %arg4[%c0_4, %c0_5] : memref<2x1xf32, #tpu.memory_space<vmem>>, vector<2x1xf32>
    tpu.vector_store %arg4[%c0_4, %c0_5], %8 {strides = array<i32>} : memref<2x1xf32, #tpu.memory_space<vmem>>, vector<2x1xf32>,
    return
  }
  func.func @transform_0(%arg0: i32) -> (i32, i32) {
    %c0_i32 = arith.constant 0 : i32
    %c0_i32_0 = arith.constant 0 : i32
    return %arg0, %c0_i32 : i32, i32
  }
  func.func @transform_1(%arg0: i32) -> (i32, i32) {
    %c0_i32 = arith.constant 0 : i32
    %c0_i32_0 = arith.constant 0 : i32
    %c0_i32_1 = arith.constant 0 : i32
    return %c0_i32, %c0_i32_0 : i32, i32
  }
  func.func @transform_2(%arg0: i32) -> i32 {
    %c0_i32 = arith.constant 0 : i32
    %c0_i32_0 = arith.constant 0 : i32
    return %c0_i32 : i32
  }
  func.func @transform_3(%arg0: i32) -> (i32, i32) {
    %c0_i32 = arith.constant 0 : i32
    %c0_i32_0 = arith.constant 0 : i32
    return %arg0, %c0_i32 : i32, i32
  }
}

</mosaic_0001>

<bundles_post_ra>
// kernel: tpu_custom_call.1
= control target key start
LH: loop header
LB: loop body
LE: loop exit
PB: predicated region body
PF: predicated region fallthrough
CT: control target
= control target key end

     0   :  { %9 = vsyncpa [#allocation4], 0  ;;  %s203_s0 = inlined_call_operand.hbm [shape: f32[2,484], index: 0, kind: input, shape index: {}]   ;;  %s204_s1 = inlined_call_operand.hbm [shape: f32[1,484], index: 1, kind: input, shape index: {}]   ;;  %s205_s2 = inlined_call_operand.<no memory space> [shape: f32[1], index: 2, kind: input, shape index: {}]   ;;  %s206_s3 = inlined_call_operand.vmem [shape: f32[2,1], index: 3, kind: output, shape index: {}]  }
   0x1   :  { %10 = vsyncpa [#allocation6], 0  ;;  %s168_s12 = smov [#allocation3]   ;;  %s169_s14 = smov [#allocation5]  }
   0x2   :  { %s17_s13 = sshll.u32 %s168_s12, 4  ;;  %s27_s15 = sshll.u32 %s169_s14, 4  ;;  %s18_s13 = int_to_ptr.vmem [resolvable:$true] %s17_s13  ;;  %s28_s15 = int_to_ptr.vmem [resolvable:$true] %s27_s15 }
   0x3   :  { %s132_s16 = scalar_lea.vmem %s18_s13, 128  ;;  %p137_p1 = scmp.lt.s32.totalorder %s18_s13, %s18_s13 }
   0x4   :  { %p133_p0 = scmp.ne.s32.totalorder %s18_s13, %s132_s16  ;;  %p138_p2 = scmp.lt.s32.totalorder %s132_s16, %s132_s16 }
   0x6   :  { %p139_p3 = por %p138_p2, %p137_p1 }
   0x8   :  { %p140_p4 = pnand %p139_p3, %p133_p0 }
   0xa   :  { %143 = shalt.err (!%p140_p4)
}
   0xb   :  { %20 = dma.hbm_to_vmem [thread:$0]  %s203_s0, 128, %s18_s13, [#allocation4]  }
   0xc   :  { %s152_s19 = scalar_lea.vmem %s28_s15, 64  ;;  %p157_p6 = scmp.lt.s32.totalorder %s28_s15, %s28_s15 }
   0xd   :  { %p153_p5 = scmp.ne.s32.totalorder %s28_s15, %s152_s19  ;;  %p158_p7 = scmp.lt.s32.totalorder %s152_s19, %s152_s19 }
   0xf   :  { %p159_p8 = por %p158_p7, %p157_p6 }
  0x11   :  { %p160_p9 = pnand %p159_p8, %p153_p5 }
  0x13   :  { %163 = shalt.err (!%p160_p9)
}
  0x14   :  { %30 = dma.hbm_to_vmem [thread:$0]  %s204_s1, 64, %s28_s15, [#allocation6]  }
  0x15   :  { %164 = dma.done.wait [#allocation4], 128  }
  0x16   :  { %165 = vsyncadd [#allocation4], 4294967168 }
  0x17   :  { %166 = dma.done.wait [#allocation6], 64  }
  0x18   :  { %167 = vsyncadd [#allocation6], 4294967232  ;;  %v42_v0 = vlaneseq  ;;  %v170_v1 = vmov 1983009808   ;;  %v40_v9 = vld [vmem:[#allocation5] sm:$0xf]  ;;  %v111_v34 = vstv %s205_s2 }
  0x19   :  { %v61_v2 = vunpack.c.l.s4 %v170_v1  ;;  %v39_v19 = vld [vmem:[#allocation3] sm:$0xff]  ;;  %vm99_vm0 = vcmask 1041408   ;;  %vm105_vm1 = vcmask 812032   ;;  %vm113_vm2 = vcmask 1024  }
  0x1a   :  { %v43_v3 = vshrl.u32 %v42_v0, 7 }
  0x1b   :  { %v62_v4 = vunpack.c.0.s8 %v61_v2 }
  0x1c   :  { %v44_v5 = vsub.s32 0, %v43_v3  ;;  %v48_v6 = vsub.s32 1, %v43_v3  ;;  %v52_v7 = vsub.s32 2, %v43_v3  ;;  %v56_v8 = vsub.s32 3, %v43_v3 }
  0x1d   :  { %v65_v10 = vsub.s32 %v62_v4, %v43_v3 }
  0x1e   :  { %v45_v11 = vrot.slane %v40_v9, %v44_v5  ;;  %v49_v12 = vrot.slane %v40_v9, %v48_v6  ;;  %v53_v13 = vrot.slane %v40_v9, %v52_v7  ;;  %v57_v14 = vrot.slane %v40_v9, %v56_v8 }
  0x20   :  { %v58_v15 = vcombine.low %v45_v11, %v49_v12  ;;  %v59_v16 = vcombine.low %v53_v13, %v57_v14 }
  0x22   :  { %v66_v17 = vrot.slane %v58_v15, %v65_v10  ;;  %v73_v18 = vrot.slane %v59_v16, %v65_v10 }
  0x24   :  { %v74_v20 = vcombine.low %v66_v17, %v73_v18 }
  0x26   :  { %v76_v21 = vmul.f32 %v74_v20, %v39_v19 }
  0x28   :  { %v78_v22 = vcombine.high %v76_v21, %v76_v21  ;;  %v85_v23 = vrot.slane %v76_v21, %v65_v10 }
  0x2a   :  { %v92_v24 = vrot.slane %v78_v22, %v65_v10  ;;  %v93_v25 = vcombine.high %v85_v23, %v85_v23  ;;  %v100_v26 = vsel %vm99_vm0, %v85_v23, 0.0 }
  0x2c   :  { %v94_v27 = vcombine.high %v92_v24, %v92_v24  ;;  %v101_v28 = vsel %vm99_vm0, %v93_v25, 0.0  ;;  %v103_v29 = vsel %vm99_vm0, %v92_v24, 0.0 }
  0x2d   :  { %v102_v30 = vadd.f32 %v101_v28, %v100_v26 }
  0x2e   :  { %v106_v31 = vsel %vm105_vm1, %v94_v27, 0.0 }
  0x2f   :  { %v104_v32 = vadd.f32 %v103_v29, %v102_v30 }
  0x31   :  { %v107_v33 = vadd.f32 %v106_v31, %v104_v32 }
  0x33   :  { %108 = vadd.xlane.f32.xlu0 %v107_v33 }
  0xbc   :  { %v109_v35 = vpop.xlane.xlu0 %108 }
  0xbd   :  { %v112_v36 = vadd.f32 %v111_v34, %v109_v35 }
  0xbf   :  { %114 = vst.msk [vmem:[%s206_s3] sm:$0x3] %vm113_vm2, %v112_v36 }
  0xc0   :  { %119 = vsyncpa [#allocation4], 1 }
  0xc1   :  { %120 = vsyncpa [#allocation6], 1 }

</bundles_post_ra>
